<compile_context>
chip_gen: v6e
topology: v6e:2x2x1
jax: 0.10.0
libtpu: 0.0.40
codegen_flags: <defaults>
</compile_context>

<pallas_src>
import functools

import jax
import jax.numpy as jnp
from jax.experimental import pallas as pl
from jax.experimental.pallas import tpu as pltpu


def _round_up(x: int, m: int) -> int:
    return ((x + m - 1) // m) * m


def _mlp_kernel(x_ref, w1_ref, b1_ref, w2_ref, b2_ref, w3_ref, b3_ref, o_ref):
    n_out = o_ref.shape[-1]
    wdt = w1_ref.dtype  # f32 by default; bf16 if prepare_params(compute_dtype=bf16)

    x = x_ref[...]                                                    # (TB, n_in)
    h = jnp.tanh(
        jnp.dot(x.astype(wdt), w1_ref[...], preferred_element_type=jnp.float32)
        + b1_ref[...]
    )                                                                 # (TB, HP) f32
    h = jnp.tanh(
        jnp.dot(h.astype(wdt), w2_ref[...], preferred_element_type=jnp.float32)
        + b2_ref[...]
    )                                                                 # (TB, HP) f32
    y = (
        jnp.dot(h.astype(wdt), w3_ref[...], preferred_element_type=jnp.float32)
        + b3_ref[...]
    )                                                                 # (TB, NP) f32
    # Narrow store: only the logical n_out columns go back to HBM.
    o_ref[...] = y[:, :n_out].astype(o_ref.dtype)


def prepare_params(params, compute_dtype=jnp.float32):
    """Pad weights/biases to lane-dense shapes ONCE.  Call once per param set.

    Returns (padded_params_dict, n_out).  Biases stay f32 (added after the f32
    accumulate); weights may be cast to bf16 via compute_dtype for v6e/v7x MXU.
    """
    n_in, H = params["w1"].shape
    n_out = params["w3"].shape[1]
    HP = _round_up(H, 128)
    NP = _round_up(n_out, 128)

    w1 = jnp.zeros((n_in, HP), compute_dtype).at[:, :H].set(
        params["w1"].astype(compute_dtype))
    w2 = jnp.zeros((HP, HP), compute_dtype).at[:H, :H].set(
        params["w2"].astype(compute_dtype))
    w3 = jnp.zeros((HP, NP), compute_dtype).at[:H, :n_out].set(
        params["w3"].astype(compute_dtype))
    b1 = jnp.zeros((1, HP), jnp.float32).at[:, :H].set(
        params["b1"].reshape(1, H).astype(jnp.float32))
    b2 = jnp.zeros((1, HP), jnp.float32).at[:, :H].set(
        params["b2"].reshape(1, H).astype(jnp.float32))
    b3 = jnp.zeros((1, NP), jnp.float32).at[:, :n_out].set(
        params["b3"].reshape(1, n_out).astype(jnp.float32))

    padded = {"w1": w1, "b1": b1, "w2": w2, "b2": b2, "w3": w3, "b3": b3}
    return padded, n_out


def _choose_tiling(B: int, block_b: int):
    """Pick (TB, Bp, n_tiles): tiles <= block_b, >=2 tiles when B >= 16 (dual-TC
    on v7x), evenly balanced so row padding stays < 8 rows per tile."""
    n_tiles = max(1, -(-B // block_b))
    if B >= 16:
        n_tiles = max(n_tiles, 2)
    TB = _round_up(-(-B // n_tiles), 8)
    Bp = n_tiles * TB
    return TB, Bp, n_tiles


@functools.partial(jax.jit, static_argnames=("n_out", "block_b"))
def zero_init_feed_forward_nn_forward(x, padded, *, n_out: int, block_b: int = 1024):
    """Forward pass.  x: (B, n_in) float32; padded: output of prepare_params."""
    B, n_in = x.shape
    HP = padded["w1"].shape[1]
    NP = padded["w3"].shape[1]
    wdt = padded["w1"].dtype

    TB, Bp, n_tiles = _choose_tiling(B, block_b)
    if Bp != B:
        # Small even pad (< 8 rows per tile); zero rows are inert.
        x = jnp.zeros((Bp, n_in), x.dtype).at[:B, :].set(x)

    resident = lambda shape: pl.BlockSpec(shape, lambda i: (0, 0),
                                          memory_space=pltpu.VMEM)

    out = pl.pallas_call(
        _mlp_kernel,
        out_shape=jax.ShapeDtypeStruct((Bp, n_out), jnp.float32),
        grid_spec=pltpu.PrefetchScalarGridSpec(
            num_scalar_prefetch=0,
            grid=(n_tiles,),
            in_specs=[
                pl.BlockSpec((TB, n_in), lambda i: (i, 0),
                             memory_space=pltpu.VMEM),   # x: streamed per tile
                resident((n_in, HP)),                    # w1: resident in VMEM
                resident((1, HP)),                       # b1
                resident((HP, HP)),                      # w2
                resident((1, HP)),                       # b2
                resident((HP, NP)),                      # w3
                resident((1, NP)),                       # b3
            ],
            # Narrow, un-padded output block: last dim equals the full array dim.
            out_specs=pl.BlockSpec((TB, n_out), lambda i: (i, 0),
                                   memory_space=pltpu.VMEM),
        ),
        compiler_params=pltpu.CompilerParams(
            dimension_semantics=("parallel",),           # v7x: shard tiles over 2 TCs
            vmem_limit_bytes=32 * 1024 * 1024,           # ample headroom everywhere
        ),
    )(x, padded["w1"], padded["b1"], padded["w2"], padded["b2"],
      padded["w3"], padded["b3"])

    return out if Bp == B else out[:B]

    # Unused wdt kept for clarity; bf16 path is driven purely by padded dtypes.


def init_params(key, n_in=6, n_out=5, n_nodes_per_layer=64):
    """Deterministic init mirroring the PyTorch module:
       - hidden Linear weights: uniform(-1/sqrt(fan_in), 1/sqrt(fan_in))
       - all biases: 0
       - final layer weight: 0
    """
    H = n_nodes_per_layer
    k1, k2 = jax.random.split(key)
    bnd1 = 1.0 / jnp.sqrt(n_in)
    bnd2 = 1.0 / jnp.sqrt(H)
    w1 = jax.random.uniform(k1, (n_in, H), jnp.float32, -bnd1, bnd1)
    w2 = jax.random.uniform(k2, (H, H), jnp.float32, -bnd2, bnd2)
    w3 = jnp.zeros((H, n_out), jnp.float32)          # zero-init final layer
    b1 = jnp.zeros((1, H), jnp.float32)
    b2 = jnp.zeros((1, H), jnp.float32)
    b3 = jnp.zeros((1, n_out), jnp.float32)
    return {"w1": w1, "b1": b1, "w2": w2, "b2": b2, "w3": w3, "b3": b3}


def _reference(x, p):
    h = jnp.tanh(x @ p["w1"] + p["b1"])
    h = jnp.tanh(h @ p["w2"] + p["b2"])
    return h @ p["w3"] + p["b3"]


if __name__ == "__main__":
    key = jax.random.PRNGKey(0)
    kx, kp, kw, kx2 = jax.random.split(key, 4)

    n_in, n_out, H, B = 6, 5, 64, 8
    x = jax.random.normal(kx, (B, n_in), jnp.float32)
    params = init_params(kp, n_in=n_in, n_out=n_out, n_nodes_per_layer=H)

    # Pad/align parameters ONCE (not per forward call).
    padded, n_out_s = prepare_params(params)

    out = zero_init_feed_forward_nn_forward(x, padded, n_out=n_out_s)
    out = jax.block_until_ready(out)

    ref = _reference(x, params)
    assert out.shape == (B, n_out)
    assert jnp.allclose(out, ref, atol=1e-5), "mismatch vs reference"
    # zero-init final layer => output is exactly zero, as in the PyTorch module
    assert jnp.allclose(out, 0.0), "expected zero output from zero-init final layer"

    # Second check: non-zero final weights, ragged batch -> exercises multi-tile
    # grid (>=2 tiles for v7x), resident weights, and the narrow output store.
    params2 = dict(params)
    params2["w3"] = jax.random.normal(kw, (H, n_out), jnp.float32) * 0.1
    padded2, _ = prepare_params(params2)
    B2 = 200  # not a multiple of 8 * n_tiles -> small row padding path
    x2 = jax.random.normal(kx2, (B2, n_in), jnp.float32)
    out2 = jax.block_until_ready(
        zero_init_feed_forward_nn_forward(x2, padded2, n_out=n_out_s))
    ref2 = _reference(x2, params2)
    assert out2.shape == (B2, n_out)
    assert jnp.allclose(out2, ref2, atol=1e-5), "mismatch vs reference (batched)"

    # TODO(synk): on v6e/v7x, switch to prepare_params(..., compute_dtype=jnp.bfloat16)
    # only if a bundle dump shows the vmatmul (extended) slot is the binding unit;
    # tolerance then loosens to ~1e-3 relative.

    print("KERNEL_OK")
</pallas_src>

<mosaic_0001>
module attributes {stable_mosaic.version = 11 : i64} {
  func.func @_mlp_kernel(%arg0: i32, %arg1: memref<8x6xf32, #tpu.memory_space<vmem>>, %arg2: memref<6x128xf32, #tpu.memory_space<vmem>>, %arg3: memref<1x128xf32, #tpu.memory_space<vmem>>, %arg4: memref<128x128xf32, #tpu.memory_space<vmem>>, %arg5: memref<1x128xf32, #tpu.memory_space<vmem>>, %arg6: memref<128x128xf32, #tpu.memory_space<vmem>>, %arg7: memref<1x128xf32, #tpu.memory_space<vmem>>, %arg8: memref<8x5xf32, #tpu.memory_space<vmem>>) attributes {dimension_semantics = [#tpu.dimension_semantics<parallel>], iteration_bounds = array<i64: 1>, scalar_prefetch = 0 : i64, scratch_operands = 0 : i64, tpu.core_type = #tpu.core_type<tc>, window_params = [{transform_indices = @transform_0, window_bounds = array<i64: 8, 6>}, {pipeline_mode = #tpu.pipeline_mode<synchronous>, transform_indices = @transform_1, window_bounds = array<i64: 6, 128>}, {pipeline_mode = #tpu.pipeline_mode<synchronous>, transform_indices = @transform_2, window_bounds = array<i64: 1, 128>}, {pipeline_mode = #tpu.pipeline_mode<synchronous>, transform_indices = @transform_3, window_bounds = array<i64: 128, 128>}, {pipeline_mode = #tpu.pipeline_mode<synchronous>, transform_indices = @transform_4, window_bounds = array<i64: 1, 128>}, {pipeline_mode = #tpu.pipeline_mode<synchronous>, transform_indices = @transform_5, window_bounds = array<i64: 128, 128>}, {pipeline_mode = #tpu.pipeline_mode<synchronous>, transform_indices = @transform_6, window_bounds = array<i64: 1, 128>}, {transform_indices = @transform_7, window_bounds = array<i64: 8, 5>}]} {
    %c0 = arith.constant 0 : index
    %c0_0 = arith.constant 0 : index
    %0 = vector.load %arg1[%c0, %c0_0] : memref<8x6xf32, #tpu.memory_space<vmem>>, vector<8x6xf32>
    %c0_1 = arith.constant 0 : index
    %c0_2 = arith.constant 0 : index
    %1 = vector.load %arg2[%c0_1, %c0_2] : memref<6x128xf32, #tpu.memory_space<vmem>>, vector<6x128xf32>
    %cst = arith.constant dense<0.000000e+00> : vector<8x128xf32>
    %2 = tpu.matmul %0, %1, %cst {dimension_numbers = #tpu.dot_dimension_numbers<[1], [0], [0], [1], [0, 0, 1, 1], [], []>} : vector<8x6xf32>, vector<6x128xf32>, vector<8x128xf32> -> vector<8x128xf32>
    %c0_3 = arith.constant 0 : index
    %c0_4 = arith.constant 0 : index
    %3 = vector.load %arg3[%c0_3, %c0_4] : memref<1x128xf32, #tpu.memory_space<vmem>>, vector<1x128xf32>
    %4 = vector.broadcast %3 : vector<1x128xf32> to vector<8x128xf32>
    %5 = arith.addf %2, %4 : vector<8x128xf32>
    %6 = math.tanh %5 : vector<8x128xf32>
    %c0_5 = arith.constant 0 : index
    %c0_6 = arith.constant 0 : index
    %7 = vector.load %arg4[%c0_5, %c0_6] : memref<128x128xf32, #tpu.memory_space<vmem>>, vector<128x128xf32>
    %cst_7 = arith.constant dense<0.000000e+00> : vector<8x128xf32>
    %8 = tpu.matmul %6, %7, %cst_7 {dimension_numbers = #tpu.dot_dimension_numbers<[1], [0], [0], [1], [0, 0, 1, 1], [], []>} : vector<8x128xf32>, vector<128x128xf32>, vector<8x128xf32> -> vector<8x128xf32>
    %c0_8 = arith.constant 0 : index
    %c0_9 = arith.constant 0 : index
    %9 = vector.load %arg5[%c0_8, %c0_9] : memref<1x128xf32, #tpu.memory_space<vmem>>, vector<1x128xf32>
    %10 = vector.broadcast %9 : vector<1x128xf32> to vector<8x128xf32>
    %11 = arith.addf %8, %10 : vector<8x128xf32>
    %12 = math.tanh %11 : vector<8x128xf32>
    %c0_10 = arith.constant 0 : index
    %c0_11 = arith.constant 0 : index
    %13 = vector.load %arg6[%c0_10, %c0_11] : memref<128x128xf32, #tpu.memory_space<vmem>>, vector<128x128xf32>
    %cst_12 = arith.constant dense<0.000000e+00> : vector<8x128xf32>
    %14 = tpu.matmul %12, %13, %cst_12 {dimension_numbers = #tpu.dot_dimension_numbers<[1], [0], [0], [1], [0, 0, 1, 1], [], []>} : vector<8x128xf32>, vector<128x128xf32>, vector<8x128xf32> -> vector<8x128xf32>
    %c0_13 = arith.constant 0 : index
    %c0_14 = arith.constant 0 : index
    %15 = vector.load %arg7[%c0_13, %c0_14] : memref<1x128xf32, #tpu.memory_space<vmem>>, vector<1x128xf32>
    %16 = vector.broadcast %15 : vector<1x128xf32> to vector<8x128xf32>
    %17 = arith.addf %14, %16 : vector<8x128xf32>
    %18 = vector.extract_strided_slice %17 {offsets = [0, 0], sizes = [8, 5], strides = [1, 1]} : vector<8x128xf32> to vector<8x5xf32>
    %c0_15 = arith.constant 0 : index
    %c0_16 = arith.constant 0 : index
    %19 = vector.load %arg8[%c0_15, %c0_16] : memref<8x5xf32, #tpu.memory_space<vmem>>, vector<8x5xf32>
    tpu.vector_store %arg8[%c0_15, %c0_16], %18 {strides = array<i32>} : memref<8x5xf32, #tpu.memory_space<vmem>>, vector<8x5xf32>,
    return
  }
  func.func @transform_0(%arg0: i32) -> (i32, i32) {
    %c0_i32 = arith.constant 0 : i32
    %c0_i32_0 = arith.constant 0 : i32
    return %arg0, %c0_i32 : i32, i32
  }
  func.func @transform_1(%arg0: i32) -> (i32, i32) {
    %c0_i32 = arith.constant 0 : i32
    %c0_i32_0 = arith.constant 0 : i32
    %c0_i32_1 = arith.constant 0 : i32
    return %c0_i32, %c0_i32_0 : i32, i32
  }
  func.func @transform_2(%arg0: i32) -> (i32, i32) {
    %c0_i32 = arith.constant 0 : i32
    %c0_i32_0 = arith.constant 0 : i32
    %c0_i32_1 = arith.constant 0 : i32
    return %c0_i32, %c0_i32_0 : i32, i32
  }
  func.func @transform_3(%arg0: i32) -> (i32, i32) {
    %c0_i32 = arith.constant 0 : i32
    %c0_i32_0 = arith.constant 0 : i32
    %c0_i32_1 = arith.constant 0 : i32
    return %c0_i32, %c0_i32_0 : i32, i32
  }
  func.func @transform_4(%arg0: i32) -> (i32, i32) {
    %c0_i32 = arith.constant 0 : i32
    %c0_i32_0 = arith.constant 0 : i32
    %c0_i32_1 = arith.constant 0 : i32
    return %c0_i32, %c0_i32_0 : i32, i32
  }
  func.func @transform_5(%arg0: i32) -> (i32, i32) {
    %c0_i32 = arith.constant 0 : i32
    %c0_i32_0 = arith.constant 0 : i32
    %c0_i32_1 = arith.constant 0 : i32
    return %c0_i32, %c0_i32_0 : i32, i32
  }
  func.func @transform_6(%arg0: i32) -> (i32, i32) {
    %c0_i32 = arith.constant 0 : i32
    %c0_i32_0 = arith.constant 0 : i32
    %c0_i32_1 = arith.constant 0 : i32
    return %c0_i32, %c0_i32_0 : i32, i32
  }
  func.func @transform_7(%arg0: i32) -> (i32, i32) {
    %c0_i32 = arith.constant 0 : i32
    %c0_i32_0 = arith.constant 0 : i32
    return %arg0, %c0_i32 : i32, i32
  }
}

</mosaic_0001>

<bundles_post_ra>
// kernel: zero_init_feed_forward_nn_forward.1
= control target key start
LH: loop header
LB: loop body
LE: loop exit
PB: predicated region body
PF: predicated region fallthrough
CT: control target
= control target key end

     0   :  { %12 = vsyncpa [#allocation3], 0  ;;  %s721_s0 = inlined_call_operand.hbm [shape: f32[8,6], index: 0, kind: input, shape index: {}]   ;;  %s722_s1 = inlined_call_operand.hbm [shape: f32[6,128], index: 1, kind: input, shape index: {}]   ;;  %s723_s2 = inlined_call_operand.vmem [shape: f32[1,128], index: 2, kind: input, shape index: {}]   ;;  %s724_s3 = inlined_call_operand.hbm [shape: f32[128,128], index: 3, kind: input, shape index: {}]   ;;  %s725_s4 = inlined_call_operand.vmem [shape: f32[1,128], index: 4, kind: input, shape index: {}]   ;;  %s726_s5 = inlined_call_operand.hbm [shape: f32[128,128], index: 5, kind: input, shape index: {}]   ;;  %s727_s6 = inlined_call_operand.vmem [shape: f32[1,128], index: 6, kind: input, shape index: {}]   ;;  %s728_s7 = inlined_call_operand.hbm [shape: f32[8,5], index: 7, kind: output, shape index: {}]  }
   0x1   :  { %13 = vsyncpa [#allocation6], 0 }
   0x2   :  { %14 = vsyncpa [#allocation9], 0 }
   0x3   :  { %15 = vsyncpa [#allocation4], 0  ;;  %s609_s24 = smov [#allocation5]   ;;  %s610_s26 = smov [#allocation2]  }
   0x4   :  { %s32_s25 = sshll.u32 %s609_s24, 4  ;;  %s22_s27 = sshll.u32 %s610_s26, 4  ;;  %s33_s25 = int_to_ptr.vmem [resolvable:$true] %s32_s25  ;;  %s23_s27 = int_to_ptr.vmem [resolvable:$true] %s22_s27 }
   0x5   :  { %s509_s28 = scalar_lea.vmem %s33_s25, 128  ;;  %p514_p1 = scmp.lt.s32.totalorder %s33_s25, %s33_s25 }
   0x6   :  { %p510_p0 = scmp.ne.s32.totalorder %s33_s25, %s509_s28  ;;  %p515_p2 = scmp.lt.s32.totalorder %s509_s28, %s509_s28 }
   0x8   :  { %p516_p3 = por %p515_p2, %p514_p1 }
   0xa   :  { %p517_p4 = pnand %p516_p3, %p510_p0 }
   0xc   :  { %520 = shalt.err (!%p517_p4)
}
   0xd   :  { %35 = dma.hbm_to_vmem [thread:$0]  %s722_s1, 128, %s33_s25, [#allocation6]  }
   0xe   :  { %s529_s8 = scalar_lea.vmem %s23_s27, 128  ;;  %p534_p6 = scmp.lt.s32.totalorder %s23_s27, %s23_s27 }
   0xf   :  { %p530_p5 = scmp.ne.s32.totalorder %s23_s27, %s529_s8  ;;  %p535_p7 = scmp.lt.s32.totalorder %s529_s8, %s529_s8 }
  0x11   :  { %p536_p8 = por %p535_p7, %p534_p6 }
  0x13   :  { %p537_p9 = pnand %p536_p8, %p530_p5 }
  0x15   :  { %540 = shalt.err (!%p537_p9)
}
  0x16   :  { %25 = dma.hbm_to_vmem [thread:$0]  %s721_s0, 128, %s23_s27, [#allocation3]  }
  0x17   :  { %s611_s11 = smov [#allocation7]  }
  0x18   :  { %s43_s12 = sshll.u32 %s611_s11, 4  ;;  %s44_s12 = int_to_ptr.vmem [resolvable:$true] %s43_s12 }
  0x19   :  { %s549_s13 = scalar_lea.vmem %s44_s12, 2048  ;;  %p554_p11 = scmp.lt.s32.totalorder %s44_s12, %s44_s12 }
  0x1a   :  { %p550_p10 = scmp.ne.s32.totalorder %s44_s12, %s549_s13  ;;  %p555_p12 = scmp.lt.s32.totalorder %s549_s13, %s549_s13 }
  0x1c   :  { %p556_p13 = por %p555_p12, %p554_p11 }
  0x1e   :  { %p557_p0 = pnand %p556_p13, %p550_p10 }
  0x20   :  { %560 = shalt.err (!%p557_p0)
}
  0x21   :  { %s612_s1 = smov 128   ;;  %s613_s14 = smov 8  }
  0x22   :  { %49 = dma.hbm_to_vmem [thread:$0]  %s724_s3, 2048, %s44_s12, [#allocation6], %s612_s1, %s612_s1, %s613_s14  }
  0x23   :  { %s614_s17 = smov [#allocation8]  }
  0x24   :  { %s57_s18 = sshll.u32 %s614_s17, 4  ;;  %s58_s18 = int_to_ptr.vmem [resolvable:$true] %s57_s18 }
  0x25   :  { %s569_s0 = scalar_lea.vmem %s58_s18, 2048  ;;  %p574_p2 = scmp.lt.s32.totalorder %s58_s18, %s58_s18 }
  0x26   :  { %p570_p1 = scmp.ne.s32.totalorder %s58_s18, %s569_s0  ;;  %p575_p3 = scmp.lt.s32.totalorder %s569_s0, %s569_s0 }
  0x28   :  { %p576_p4 = por %p575_p3, %p574_p2 }
  0x2a   :  { %p577_p5 = pnand %p576_p4, %p570_p1 }
  0x2c   :  { %580 = shalt.err (!%p577_p5)
}
  0x2d   :  { %63 = dma.hbm_to_vmem [thread:$0]  %s726_s5, 2048, %s58_s18, [#allocation9], %s612_s1, %s612_s1, %s613_s14  }
  0x2e   :  { %601 = dma.done.wait [#allocation3], 128  }
  0x2f   :  { %602 = vsyncadd [#allocation3], 4294967168 }
  0x30   :  { %603 = dma.done.wait [#allocation6], 2176  }
  0x31   :  { %604 = vsyncadd [#allocation6], 4294965120 }
  0x32   :  { %605 = dma.done.wait [#allocation9], 2048  }
  0x33   :  { %606 = vsyncadd [#allocation9], 4294965248  ;;  %v615_v0 = vmov 0.0   ;;  %vm616_vm0 = vmmov 0   ;;  %vm91_vm1 = vcmask 1045504   ;;  %vm87_vm2 = vcmask 48128  }
  0x34   :  { %413 = vmatprep.subr.mxu0 %v615_v0  ;;  %415 = vmatprep.mubr.msk.f32.mxu0 %vm616_vm0, %v615_v0  ;;  %v79_v1 = vld [vmem:[#allocation5] sm:$0x3f]  ;;  %v78_v2 = vld [vmem:[#allocation2] sm:$0xff]  ;;  %v179_v5 = vld [vmem:[#allocation7 + $0x68] sm:$0xff]  ;;  %s617_s24 = smov [#allocation10]   ;;  %vm353_vm3 = vcmask 39936  }
  0x35   :  { %418 = vmatprep.subr.mxu1 %v615_v0  ;;  %450 = vmatprep.mubr.msk.f32.mxu1 %vm616_vm0, %v615_v0  ;;  %v181_v3 = vld [vmem:[#allocation7 + $0x78] sm:$0xff]  ;;  %v180_v4 = vld [vmem:[#allocation7 + $0x70] sm:$0xff]  ;;  %v178_v6 = vld [vmem:[#allocation7 + $0x60] sm:$0xff]  ;;  %s361_s25 = sshll.u32 %s617_s24, 4  ;;  %s362_s25 = int_to_ptr.vmem [resolvable:$true] %s361_s25 }
  0x36   :  { %414 = vmatpush3.msk.msra.mxu0 %vm91_vm1, %v79_v1  ;;  %419 = vmatpush3.msra.mxu1 %v181_v3  ;;  %v177_v7 = vld [vmem:[#allocation7 + $0x58] sm:$0xff]  ;;  %v176_v8 = vld [vmem:[#allocation7 + $0x50] sm:$0xff]  ;;  %v175_v9 = vld [vmem:[#allocation7 + $0x48] sm:$0xff]  ;;  %s581_s26 = scalar_lea.vmem %s362_s25, 128  ;;  %p586_p7 = scmp.lt.s32.totalorder %s362_s25, %s362_s25 }
  0x37   :  { %416 = vmatmul.mubr.msk.f32.vlgmr.msra.gmra.mxu0 %vm87_vm2, %v78_v2  ;;  %420 = vmatprep.subr.mxu1 %v615_v0  ;;  %v174_v10 = vld [vmem:[#allocation7 + $0x40] sm:$0xff]  ;;  %v173_v11 = vld [vmem:[#allocation7 + $0x38] sm:$0xff]  ;;  %v172_v12 = vld [vmem:[#allocation7 + $0x30] sm:$0xff]  ;;  %p582_p6 = scmp.ne.s32.totalorder %s362_s25, %s581_s26  ;;  %p587_p8 = scmp.lt.s32.totalorder %s581_s26, %s581_s26 }
  0x38   :  { %421 = vmatpush3.msra.mxu1 %v180_v4  ;;  %453 = vmatprep.subr.mxu0 %v615_v0  ;;  %v171_v13 = vld [vmem:[#allocation7 + $0x28] sm:$0xff]  ;;  %v170_v14 = vld [vmem:[#allocation7 + $0x20] sm:$0xff]  ;;  %v169_v15 = vld [vmem:[#allocation7 + $0x18] sm:$0xff] }
  0x39   :  { %422 = vmatprep.subr.mxu1 %v615_v0  ;;  %485 = vmatprep.mubr.msk.f32.mxu0 %vm616_vm0, %v615_v0  ;;  %v168_v16 = vld [vmem:[#allocation7 + $0x10] sm:$0xff]  ;;  %v167_v17 = vld [vmem:[#allocation7 + $0x8] sm:$0xff]  ;;  %v166_v18 = vld [vmem:[#allocation7] sm:$0xff]  ;;  %p588_p9 = por %p587_p8, %p586_p7 }
  0x3a   :  { %423 = vmatpush3.msra.mxu1 %v179_v5  ;;  %v275_v19 = vld [vmem:[#allocation8 + $0x78] sm:$0xff]  ;;  %v274_v20 = vld [vmem:[#allocation8 + $0x70] sm:$0xff]  ;;  %v273_v21 = vld [vmem:[#allocation8 + $0x68] sm:$0xff] }
  0x3b   :  { %424 = vmatprep.subr.mxu1 %v615_v0  ;;  %454 = vmatpush3.msra.mxu0 %v275_v19  ;;  %v272_v22 = vld [vmem:[#allocation8 + $0x60] sm:$0xff]  ;;  %v271_v23 = vld [vmem:[#allocation8 + $0x58] sm:$0xff]  ;;  %v270_v24 = vld [vmem:[#allocation8 + $0x50] sm:$0xff]  ;;  %p589_p10 = pnand %p588_p9, %p582_p6 }
  0x3c   :  { %425 = vmatpush3.msra.mxu1 %v178_v6  ;;  %455 = vmatprep.subr.mxu0 %v615_v0  ;;  %v269_v25 = vld [vmem:[#allocation8 + $0x48] sm:$0xff]  ;;  %v372_v26 = vld [vmem:[%s723_s2] ss:$0 sm:$0xff]  ;;  %v268_v31 = vld [vmem:[#allocation8 + $0x40] sm:$0xff] }
  0x3d   :  { %426 = vmatprep.subr.mxu1 %v615_v0  ;;  %456 = vmatpush3.msra.mxu0 %v274_v20  ;;  %v267_v32 = vld [vmem:[#allocation8 + $0x38] sm:$0xff]  ;;  %v266_v33 = vld [vmem:[#allocation8 + $0x30] sm:$0xff]  ;;  %v265_v34 = vld [vmem:[#allocation8 + $0x28] sm:$0xff] }
  0x3e   :  { %427 = vmatpush3.msra.mxu1 %v177_v7  ;;  %457 = vmatprep.subr.mxu0 %v615_v0  ;;  %v264_v35 = vld [vmem:[#allocation8 + $0x20] sm:$0xff]  ;;  %v263_v36 = vld [vmem:[#allocation8 + $0x18] sm:$0xff]  ;;  %v262_v37 = vld [vmem:[#allocation8 + $0x10] sm:$0xff] }
  0x3f   :  { %428 = vmatprep.subr.mxu1 %v615_v0  ;;  %458 = vmatpush3.msra.mxu0 %v273_v21  ;;  %v261_v38 = vld [vmem:[#allocation8 + $0x8] sm:$0xff]  ;;  %v260_v39 = vld [vmem:[#allocation8] sm:$0xff]  ;;  %v375_v40 = vld [vmem:[%s725_s4] ss:$0 sm:$0xff] }
  0x40   :  { %429 = vmatpush3.msra.mxu1 %v176_v8  ;;  %459 = vmatprep.subr.mxu0 %v615_v0  ;;  %v376_v45 = vld [vmem:[%s727_s6] ss:$0 sm:$0xff] }
  0x41   :  { %430 = vmatprep.subr.mxu1 %v615_v0  ;;  %460 = vmatpush3.msra.mxu0 %v272_v22 }
  0x42   :  { %431 = vmatpush3.msra.mxu1 %v175_v9  ;;  %461 = vmatprep.subr.mxu0 %v615_v0 }
  0x43   :  { %432 = vmatprep.subr.mxu1 %v615_v0  ;;  %462 = vmatpush3.msra.mxu0 %v271_v23 }
  0x44   :  { %433 = vmatpush3.msra.mxu1 %v174_v10  ;;  %463 = vmatprep.subr.mxu0 %v615_v0 }
  0x45   :  { %434 = vmatprep.subr.mxu1 %v615_v0  ;;  %464 = vmatpush3.msra.mxu0 %v270_v24 }
  0x46   :  { %435 = vmatpush3.msra.mxu1 %v173_v11  ;;  %465 = vmatprep.subr.mxu0 %v615_v0 }
  0x47   :  { %436 = vmatprep.subr.mxu1 %v615_v0  ;;  %466 = vmatpush3.msra.mxu0 %v269_v25 }
  0x48   :  { %437 = vmatpush3.msra.mxu1 %v172_v12  ;;  %467 = vmatprep.subr.mxu0 %v615_v0 }
  0x49   :  { %438 = vmatprep.subr.mxu1 %v615_v0  ;;  %468 = vmatpush3.msra.mxu0 %v268_v31 }
  0x4a   :  { %439 = vmatpush3.msra.mxu1 %v171_v13  ;;  %469 = vmatprep.subr.mxu0 %v615_v0 }
  0x4b   :  { %440 = vmatprep.subr.mxu1 %v615_v0  ;;  %470 = vmatpush3.msra.mxu0 %v267_v32 }
  0x4c   :  { %441 = vmatpush3.msra.mxu1 %v170_v14  ;;  %471 = vmatprep.subr.mxu0 %v615_v0 }
  0x4d   :  { %442 = vmatprep.subr.mxu1 %v615_v0  ;;  %472 = vmatpush3.msra.mxu0 %v266_v33 }
  0x4e   :  { %443 = vmatpush3.msra.mxu1 %v169_v15  ;;  %473 = vmatprep.subr.mxu0 %v615_v0 }
  0x4f   :  { %444 = vmatprep.subr.mxu1 %v615_v0  ;;  %474 = vmatpush3.msra.mxu0 %v265_v34 }
  0x50   :  { %445 = vmatpush3.msra.mxu1 %v168_v16  ;;  %475 = vmatprep.subr.mxu0 %v615_v0 }
  0x51   :  { %446 = vmatprep.subr.mxu1 %v615_v0  ;;  %476 = vmatpush3.msra.mxu0 %v264_v35 }
  0x52   :  { %447 = vmatpush3.msra.mxu1 %v167_v17  ;;  %477 = vmatprep.subr.mxu0 %v615_v0 }
  0x53   :  { %448 = vmatprep.subr.mxu1 %v615_v0  ;;  %478 = vmatpush3.msra.mxu0 %v263_v36 }
  0x54   :  { %449 = vmatpush3.msra.mxu1 %v166_v18  ;;  %479 = vmatprep.subr.mxu0 %v615_v0 }
  0x55   :  { %480 = vmatpush3.msra.mxu0 %v262_v37 }
  0x56   :  { %481 = vmatprep.subr.mxu0 %v615_v0 }
  0x57   :  { %482 = vmatpush3.msra.mxu0 %v261_v38 }
  0x58   :  { %483 = vmatprep.subr.mxu0 %v615_v0 }
  0x59   :  { %484 = vmatpush3.msra.mxu0 %v260_v39 }
  0xf7   :  { %v161_v27 = vpop.f32.mrf.mxu0 }
  0xf8   :  { %v162_v28 = vadd.f32 %v372_v26, %v161_v27 }
  0xf9   :  { %v417_v29 = vpop.f32.mrf.mxu0 }
  0xfa   :  { %497 = vtanh.f32 %v162_v28 }
 0x107   :  { %v498_v30 = vpop.eup %497 }
 0x108   :  { %451 = vmatmul.mubr.f32.vlgmr.msra.gmra.mxu1 %v498_v30 }
 0x1c8   :  { %v255_v41 = vpop.f32.mrf.mxu1 }
 0x1c9   :  { %v256_v42 = vadd.f32 %v375_v40, %v255_v41 }
 0x1ca   :  { %v452_v43 = vpop.f32.mrf.mxu1 }
 0x1cb   :  { %499 = vtanh.f32 %v256_v42 }
 0x1d8   :  { %v500_v44 = vpop.eup %499 }
 0x1d9   :  { %486 = vmatmul.mubr.f32.vlgmr.msra.gmra.mxu0 %v500_v44 }
 0x299   :  { %v349_v46 = vpop.f32.mrf.mxu0 }
 0x29a   :  { %v350_v47 = vadd.f32 %v376_v45, %v349_v46 }
 0x29b   :  { %v487_v48 = vpop.f32.mrf.mxu0 }
 0x29c   :  { %354 = vst.msk [vmem:[#allocation10] sm:$0xff] %vm353_vm3, %v350_v47 }
 0x29d   :  { %592 = shalt.err (!%p589_p10)
}
 0x29e   :  { %364 = dma.vmem_to_hbm [thread:$0]  %s362_s25, 128, %s728_s7, [#allocation4]  }
 0x29f   :  { %607 = dma.done.wait [#allocation4], 128  }
 0x2a0   :  { %608 = vsyncadd [#allocation4], 4294967168 }
 0x2a1   :  { %368 = vsyncpa [#allocation3], 1 }
 0x2a2   :  { %369 = vsyncpa [#allocation6], 1 }
 0x2a3   :  { %370 = vsyncpa [#allocation9], 1 }
 0x2a4   :  { %371 = vsyncpa [#allocation4], 1 }

</bundles_post_ra>
